<compile_context>
chip_gen: v5e
topology: v5e:2x2
jax: 0.10.0
libtpu: 0.0.40
codegen_flags: <defaults>
</compile_context>

<pallas_src>
import functools

import jax
import jax.numpy as jnp
from jax.experimental import pallas as pl
from jax.experimental.pallas import tpu as pltpu


def _biasfree_layernorm_kernel(x_ref, w_ref, g_ref, o_ref, *, eps):
    """One (tile, L) packed block.

    x_ref : (T, L)  packed tile; each 128-lane row holds L // C logical rows of width C
    w_ref : (1, L)  weight tiled to the packed lane layout
    g_ref : (L, L)  block-diagonal (ones/C) matrix: x @ G == per-segment mean,
                    already broadcast back across each segment's C lanes
    o_ref : (T, L)  output tile
    """
    x = x_ref[...].astype(jnp.float32)            # (T, L)
    w = w_ref[...].astype(jnp.float32)            # (1, L), broadcasts over rows
    g = g_ref[...]                                # (L, L) f32 constant

    # Two independent MXU matmuls (no FIFO serialization between them).
    # HIGHEST: Mosaic dot lowering only supports DEFAULT/HIGHEST; DEFAULT is too lossy
    # for the one-pass variance below.
    mean_b = jnp.dot(x, g, preferred_element_type=jnp.float32,
                     precision=jax.lax.Precision.HIGHEST)         # (T, L)
    ex2_b = jnp.dot(x * x, g, preferred_element_type=jnp.float32,
                    precision=jax.lax.Precision.HIGHEST)          # (T, L)

    # One-pass biased variance, lane-broadcast per segment; clamp guards cancellation.
    var_b = jnp.maximum(ex2_b - mean_b * mean_b, 0.0)             # (T, L)
    scale = jax.lax.rsqrt(var_b + eps) * w                        # EUP rsqrt, free slot
    o_ref[...] = (x * scale).astype(o_ref.dtype)


def biasfree_layernorm(x, weight, *, block_bytes=2 * 1024 * 1024):
    """out = x / sqrt(var(x, axis=-1, biased) + 1e-5) * weight.

    x: (..., C) array, weight: (C,) array.  Returns same shape/dtype as x.
    """
    orig_shape = x.shape
    C = int(orig_shape[-1])
    assert weight.shape == (C,)
    eps = 1e-5

    x2d = x.reshape(-1, C)
    n_rows = x2d.shape[0]
    if n_rows == 0:
        return x

    # Lane-dense packing factor: P logical rows per 128-lane row when C divides 128.
    if 0 < C <= 128 and 128 % C == 0:
        pack = 128 // C
    else:
        pack = 1                                  # e.g. C = 48: use full C-wide rows
    L = pack * C

    # Pad a few zero rows (instead of dropping to pack=1) when n_rows % pack != 0.
    pad_rows = (-n_rows) % pack
    if pad_rows:
        x2d = jnp.pad(x2d, ((0, pad_rows), (0, 0)))
    n_rows_p = n_rows + pad_rows

    xp = x2d.reshape(n_rows_p // pack, L)         # free: contiguous row-major view
    n_packed = xp.shape[0]

    wp = (jnp.tile(weight, pack) if pack > 1 else weight).reshape(1, L)

    # Block-diagonal segmented-mean matrix with 1/C folded in (resident in VMEM for
    # the whole grid since its block index never changes).
    seg = jnp.arange(L, dtype=jnp.int32) // C
    g = (seg[:, None] == seg[None, :]).astype(jnp.float32) * jnp.float32(1.0 / C)

    # Tile sizing: byte budget is the limiter (~2 MiB blocks); medium inputs are
    # split into >= 4 blocks so both v7x TensorCores get work and DMA overlaps.
    dsize = jnp.dtype(x.dtype).itemsize
    max_tile = max(8, ((block_bytes // max(L * dsize, 1)) // 8) * 8)
    if n_packed <= 8:
        tile = n_packed                           # tiny input: single full-extent block
    else:
        min_blocks = 4
        tile_split = ((-(-n_packed // min_blocks)) + 7) // 8 * 8
        tile = max(8, min(max_tile, tile_split))
    grid_len = -(-n_packed // tile)               # ragged last block handled by Pallas

    kernel = functools.partial(_biasfree_layernorm_kernel, eps=eps)

    cost = pl.CostEstimate(
        flops=int(4 * n_packed * L * L + 6 * n_packed * L),
        transcendentals=int(n_packed * L),
        bytes_accessed=int(2 * n_packed * L * dsize + (L * L + 2 * L) * 4),
    )

    out = pl.pallas_call(
        kernel,
        out_shape=jax.ShapeDtypeStruct((n_packed, L), x.dtype),
        grid_spec=pltpu.PrefetchScalarGridSpec(
            num_scalar_prefetch=0,
            grid=(grid_len,),
            in_specs=[
                pl.BlockSpec((tile, L), lambda i: (i, 0)),     # packed activations
                pl.BlockSpec((1, L), lambda i: (0, 0)),        # tiled weight
                pl.BlockSpec((L, L), lambda i: (0, 0)),        # block-diagonal G
            ],
            out_specs=pl.BlockSpec((tile, L), lambda i: (i, 0)),
        ),
        compiler_params=pltpu.CompilerParams(
            dimension_semantics=("parallel",),
            vmem_limit_bytes=32 * 1024 * 1024,
        ),
        cost_estimate=cost,
    )(xp, wp, g)

    out = out.reshape(n_rows_p, C)
    if pad_rows:
        out = out[:n_rows]
    return out.reshape(orig_shape)


if __name__ == "__main__":
    key = jax.random.PRNGKey(0)

    def reference(x, w):
        sigma = jnp.var(x, axis=-1, keepdims=True)       # unbiased=False
        return x / jnp.sqrt(sigma + 1e-5) * w

    k1, k2, k3 = jax.random.split(key, 3)

    # Primary small shape consistent with the module: tokens over hidden dim 32.
    batch, seq, hidden = 2, 8, 32
    x = jax.random.normal(k1, (batch, seq, hidden), dtype=jnp.float32)
    weight = jnp.ones((hidden,), dtype=jnp.float32)      # nn.Parameter(torch.ones(C))
    out = jax.block_until_ready(biasfree_layernorm(x, weight))
    assert out.shape == x.shape and out.dtype == x.dtype
    assert jnp.allclose(out, reference(x, weight), atol=1e-4, rtol=1e-4)

    # Larger case: multi-step grid (>= 4 blocks) + ragged last block on the packed path.
    x2 = jax.random.normal(k2, (4, 3000, 32), dtype=jnp.float32)
    w2 = jax.random.normal(k3, (32,), dtype=jnp.float32) * 0.1 + 1.0
    out2 = jax.block_until_ready(biasfree_layernorm(x2, w2))
    assert jnp.allclose(out2, reference(x2, w2), atol=1e-4, rtol=1e-4)

    # Row count not a multiple of the packing factor: exercises the zero-pad path.
    x3 = jax.random.normal(k2, (3, 7, 32), dtype=jnp.float32)
    out3 = jax.block_until_ready(biasfree_layernorm(x3, w2))
    assert jnp.allclose(out3, reference(x3, w2), atol=1e-4, rtol=1e-4)

    # Fallback path: C does not divide 128 (no lane packing, pack = 1).
    x4 = jax.random.normal(k2, (2, 7, 48), dtype=jnp.float32)
    w4 = jnp.ones((48,), dtype=jnp.float32)
    out4 = jax.block_until_ready(biasfree_layernorm(x4, w4))
    assert jnp.allclose(out4, reference(x4, w4), atol=1e-4, rtol=1e-4)

    print("KERNEL_OK")
</pallas_src>

<mosaic_0001>
module attributes {stable_mosaic.version = 11 : i64} {
  func.func @_biasfree_layernorm_kernel(%arg0: i32, %arg1: memref<4x128xf32, #tpu.memory_space<vmem>>, %arg2: memref<1x128xf32, #tpu.memory_space<vmem>>, %arg3: memref<128x128xf32, #tpu.memory_space<vmem>>, %arg4: memref<4x128xf32, #tpu.memory_space<vmem>>) attributes {dimension_semantics = [#tpu.dimension_semantics<parallel>], iteration_bounds = array<i64: 1>, scalar_prefetch = 0 : i64, scratch_operands = 0 : i64, tpu.core_type = #tpu.core_type<tc>, window_params = [{transform_indices = @transform_0, window_bounds = array<i64: 4, 128>}, {pipeline_mode = #tpu.pipeline_mode<synchronous>, transform_indices = @transform_1, window_bounds = array<i64: 1, 128>}, {pipeline_mode = #tpu.pipeline_mode<synchronous>, transform_indices = @transform_2, window_bounds = array<i64: 128, 128>}, {transform_indices = @transform_3, window_bounds = array<i64: 4, 128>}]} {
    %c0 = arith.constant 0 : index
    %c0_0 = arith.constant 0 : index
    %0 = vector.load %arg1[%c0, %c0_0] : memref<4x128xf32, #tpu.memory_space<vmem>>, vector<4x128xf32>
    %c0_1 = arith.constant 0 : index
    %c0_2 = arith.constant 0 : index
    %1 = vector.load %arg2[%c0_1, %c0_2] : memref<1x128xf32, #tpu.memory_space<vmem>>, vector<1x128xf32>
    %c0_3 = arith.constant 0 : index
    %c0_4 = arith.constant 0 : index
    %2 = vector.load %arg3[%c0_3, %c0_4] : memref<128x128xf32, #tpu.memory_space<vmem>>, vector<128x128xf32>
    %cst = arith.constant dense<0.000000e+00> : vector<4x128xf32>
    %3 = tpu.matmul %0, %2, %cst {dimension_numbers = #tpu.dot_dimension_numbers<[1], [0], [0], [1], [0, 0, 1, 1], [], []>, precision = #tpu.contract_precision<fp32>} : vector<4x128xf32>, vector<128x128xf32>, vector<4x128xf32> -> vector<4x128xf32>
    %4 = arith.mulf %0, %0 : vector<4x128xf32>
    %cst_5 = arith.constant dense<0.000000e+00> : vector<4x128xf32>
    %5 = tpu.matmul %4, %2, %cst_5 {dimension_numbers = #tpu.dot_dimension_numbers<[1], [0], [0], [1], [0, 0, 1, 1], [], []>, precision = #tpu.contract_precision<fp32>} : vector<4x128xf32>, vector<128x128xf32>, vector<4x128xf32> -> vector<4x128xf32>
    %6 = arith.mulf %3, %3 : vector<4x128xf32>
    %7 = arith.subf %5, %6 : vector<4x128xf32>
    %cst_6 = arith.constant 0.000000e+00 : f32
    %8 = vector.broadcast %cst_6 : f32 to vector<4x128xf32>
    %9 = arith.maximumf %7, %8 : vector<4x128xf32>
    %cst_7 = arith.constant 9.99999974E-6 : f32
    %10 = vector.broadcast %cst_7 : f32 to vector<4x128xf32>
    %11 = arith.addf %9, %10 : vector<4x128xf32>
    %12 = math.rsqrt %11 : vector<4x128xf32>
    %13 = vector.broadcast %1 : vector<1x128xf32> to vector<4x128xf32>
    %14 = arith.mulf %12, %13 : vector<4x128xf32>
    %15 = arith.mulf %0, %14 : vector<4x128xf32>
    %c0_8 = arith.constant 0 : index
    %c0_9 = arith.constant 0 : index
    %16 = vector.load %arg4[%c0_8, %c0_9] : memref<4x128xf32, #tpu.memory_space<vmem>>, vector<4x128xf32>
    tpu.vector_store %arg4[%c0_8, %c0_9], %15 {strides = array<i32>} : memref<4x128xf32, #tpu.memory_space<vmem>>, vector<4x128xf32>,
    return
  }
  func.func @transform_0(%arg0: i32) -> (i32, i32) {
    %c0_i32 = arith.constant 0 : i32
    %c0_i32_0 = arith.constant 0 : i32
    return %arg0, %c0_i32 : i32, i32
  }
  func.func @transform_1(%arg0: i32) -> (i32, i32) {
    %c0_i32 = arith.constant 0 : i32
    %c0_i32_0 = arith.constant 0 : i32
    %c0_i32_1 = arith.constant 0 : i32
    return %c0_i32, %c0_i32_0 : i32, i32
  }
  func.func @transform_2(%arg0: i32) -> (i32, i32) {
    %c0_i32 = arith.constant 0 : i32
    %c0_i32_0 = arith.constant 0 : i32
    %c0_i32_1 = arith.constant 0 : i32
    return %c0_i32, %c0_i32_0 : i32, i32
  }
  func.func @transform_3(%arg0: i32) -> (i32, i32) {
    %c0_i32 = arith.constant 0 : i32
    %c0_i32_0 = arith.constant 0 : i32
    return %arg0, %c0_i32 : i32, i32
  }
}

</mosaic_0001>

<bundles_post_ra>
// kernel: tpu_custom_call.1
= control target key start
LH: loop header
LB: loop body
LE: loop exit
PB: predicated region body
PF: predicated region fallthrough
CT: control target
= control target key end

     0   :  { %8 = vsyncpa [#allocation3], 0  ;;  %s1349_s0 = inlined_call_operand.hbm [shape: f32[4,128], index: 0, kind: input, shape index: {}]   ;;  %s1350_s1 = inlined_call_operand.hbm [shape: f32[1,128], index: 1, kind: input, shape index: {}]   ;;  %s1351_s2 = inlined_call_operand.hbm [shape: f32[128,128], index: 2, kind: input, shape index: {}]   ;;  %s1352_s3 = inlined_call_operand.hbm [shape: f32[4,128], index: 3, kind: output, shape index: {}]  }
   0x1   :  { %9 = vsyncpa [#allocation6], 0  ;;  %s27_s14 = sshll.u32 %s1350_s1, 4  ;;  %s28_s14 = int_to_ptr.hbm [resolvable:$true] %s27_s14 }
   0x2   :  { %10 = vsyncpa [#allocation4], 0  ;;  %s908_s15 = smov [#allocation5]   ;;  %s16_s19 = sshll.u32 %s1349_s0, 4  ;;  %s17_s19 = int_to_ptr.hbm [resolvable:$true] %s16_s19 }
   0x3   :  { %s29_s16 = sshll.u32 %s908_s15, 4  ;;  %s909_s20 = smov [#allocation2]   ;;  %s30_s16 = int_to_ptr.vmem [resolvable:$true] %s29_s16 }
   0x4   :  { %32 = dma.hbm_to_vmem [thread:$0]  %s28_s14, 16, %s30_s16, [#allocation6]  }
   0x5   :  { %s18_s21 = sshll.u32 %s909_s20, 4  ;;  %s37_s24 = sshll.u32 %s1351_s2, 4  ;;  %s19_s21 = int_to_ptr.vmem [resolvable:$true] %s18_s21  ;;  %s38_s24 = int_to_ptr.hbm [resolvable:$true] %s37_s24 }
   0x6   :  { %21 = dma.hbm_to_vmem [thread:$0]  %s17_s19, 64, %s19_s21, [#allocation3]  }
   0x7   :  { %s910_s1 = smov [#allocation7]   ;;  %s911_s26 = smov 128  }
   0x8   :  { %s39_s25 = sshll.u32 %s910_s1, 4  ;;  %s912_s27 = smov 8   ;;  %s40_s25 = int_to_ptr.vmem [resolvable:$true] %s39_s25 }
   0x9   :  { %45 = dma.hbm_to_vmem [thread:$0]  %s38_s24, 2048, %s40_s25, [#allocation6], %s911_s26, %s911_s26, %s912_s27  }
   0xa   :  { %902 = dma.done.wait [#allocation3], 64  }
   0xb   :  { %903 = vsyncadd [#allocation3], 4294967232 }
   0xc   :  { %904 = dma.done.wait [#allocation6], 2064  }
   0xd   :  { %905 = vsyncadd [#allocation6], 4294965232  ;;  %v75_v0 = vld [vmem:[#allocation7 + $0x78] sm:$0xff]  ;;  %v74_v1 = vld [vmem:[#allocation7 + $0x70] sm:$0xff]  ;;  %s913_s0 = smov [#allocation8]   ;;  %s786_s30 = sshll.u32 %s1352_s3, 4  ;;  %s787_s30 = int_to_ptr.hbm [resolvable:$true] %s786_s30 }
   0xe   :  { %v73_v2 = vld [vmem:[#allocation7 + $0x68] sm:$0xff]  ;;  %v943_v3 = vand.u32 4294901760, %v75_v0  ;;  %v945_v4 = vand.u32 4294901760, %v74_v1  ;;  %v72_v6 = vld [vmem:[#allocation7 + $0x60] sm:$0xff]  ;;  %v71_v7 = vld [vmem:[#allocation7 + $0x58] sm:$0xff]  ;;  %s784_s2 = sshll.u32 %s913_s0, 4  ;;  %s785_s2 = int_to_ptr.vmem [resolvable:$true] %s784_s2 }
   0xf   :  { %v947_v5 = vand.u32 4294901760, %v73_v2  ;;  %v70_v8 = vld [vmem:[#allocation7 + $0x50] sm:$0xff]  ;;  %v949_v9 = vand.u32 4294901760, %v72_v6  ;;  %v951_v10 = vand.u32 4294901760, %v71_v7  ;;  %v69_v12 = vld [vmem:[#allocation7 + $0x48] sm:$0xff]  ;;  %v68_v13 = vld [vmem:[#allocation7 + $0x40] sm:$0xff] }
  0x10   :  { %v953_v11 = vand.u32 4294901760, %v70_v8  ;;  %77 = vmatpush.msra.mxu0 %v943_v3  ;;  %v957_v14 = vsub.f32 %v75_v0, %v943_v3  ;;  %v960_v15 = vsub.f32 %v74_v1, %v945_v4  ;;  %273 = vmatpush.msra.mxu3 %v943_v3  ;;  %v966_v17 = vand.u32 4294901760, %v69_v12  ;;  %v67_v21 = vld [vmem:[#allocation7 + $0x38] sm:$0xff]  ;;  %v66_v34 = vld [vmem:[#allocation7 + $0x30] sm:$0xff]  ;;  %v65_v35 = vld [vmem:[#allocation7 + $0x28] sm:$0xff] }
  0x11   :  { %v964_v16 = vsub.f32 %v73_v2, %v947_v5  ;;  %v969_v18 = vsub.f32 %v72_v6, %v949_v9  ;;  %v972_v19 = vsub.f32 %v71_v7, %v951_v10  ;;  %v988_v25 = vand.u32 4294901760, %v68_v13  ;;  %v64_v42 = vld [vmem:[#allocation7 + $0x20] sm:$0xff]  ;;  %v63_v48 = vld [vmem:[#allocation7 + $0x18] sm:$0xff]  ;;  %v62_v54 = vld [vmem:[#allocation7 + $0x10] sm:$0xff] }
  0x12   :  { %v975_v20 = vsub.f32 %v70_v8, %v953_v11  ;;  %220 = vmatpush.msra.mxu2 %v957_v14  ;;  %79 = vmatpush.msra.mxu0 %v945_v4  ;;  %v980_v22 = vand.u32 4294901760, %v957_v14  ;;  %v983_v23 = vand.u32 4294901760, %v960_v15  ;;  %v998_v28 = vsub.f32 %v69_v12, %v966_v17  ;;  %v61_v60 = vld [vmem:[#allocation7 + $0x8] sm:$0xff]  ;;  %v60_v1 = vld [vmem:[#allocation7] sm:$0xff] }
  0x13   :  { %v986_v24 = vand.u32 4294901760, %v964_v16  ;;  %275 = vmatpush.msra.mxu3 %v945_v4  ;;  %v992_v26 = vand.u32 4294901760, %v969_v18  ;;  %v995_v27 = vand.u32 4294901760, %v972_v19  ;;  %v1008_v32 = vand.u32 4294901760, %v67_v21 }
  0x14   :  { %223 = vmatpush.msra.mxu2 %v960_v15  ;;  %81 = vmatpush.msra.mxu0 %v947_v5  ;;  %v120_v29 = vsub.f32 %v957_v14, %v980_v22  ;;  %v126_v30 = vsub.f32 %v960_v15, %v983_v23  ;;  %v1012_v33 = vand.u32 4294901760, %v975_v20  ;;  %v1023_v39 = vsub.f32 %v68_v13, %v988_v25 }
  0x15   :  { %v132_v31 = vsub.f32 %v964_v16, %v986_v24  ;;  %277 = vmatpush.msra.mxu3 %v947_v5  ;;  %v138_v38 = vsub.f32 %v969_v18, %v992_v26  ;;  %v144_v40 = vsub.f32 %v972_v19, %v995_v27  ;;  %v1029_v41 = vand.u32 4294901760, %v998_v28 }
  0x16   :  { %v1014_v36 = vand.u32 4294901760, %v120_v29  ;;  %226 = vmatpush.msra.mxu2 %v964_v16  ;;  %83 = vmatpush.msra.mxu0 %v949_v9  ;;  %v1018_v37 = vand.u32 4294901760, %v126_v30  ;;  %v1036_v44 = vsub.f32 %v67_v21, %v1008_v32  ;;  %v1038_v45 = vand.u32 4294901760, %v66_v34 }
  0x17   :  { %279 = vmatpush.msra.mxu3 %v949_v9  ;;  %v1033_v43 = vand.u32 4294901760, %v132_v31  ;;  %v1040_v46 = vand.u32 4294901760, %v65_v35  ;;  %v150_v47 = vsub.f32 %v975_v20, %v1012_v33  ;;  %v1048_v49 = vand.u32 4294901760, %v138_v38 }
  0x18   :  { %122 = vmatpush.msra.mxu1 %v1014_v36  ;;  %229 = vmatpush.msra.mxu2 %v969_v18  ;;  %v1051_v50 = vand.u32 4294901760, %v1023_v39  ;;  %v1054_v51 = vsub.f32 %v66_v34, %v1038_v45  ;;  %v1056_v52 = vand.u32 4294901760, %v64_v42  ;;  %v156_v53 = vsub.f32 %v998_v28, %v1029_v41 }
  0x19   :  { %85 = vmatpush.msra.mxu0 %v951_v10  ;;  %281 = vmatpush.msra.mxu3 %v951_v10  ;;  %v1064_v55 = vand.u32 4294901760, %v144_v40  ;;  %v1067_v56 = vand.u32 4294901760, %v1036_v44  ;;  %v1070_v57 = vsub.f32 %v65_v35, %v1040_v46  ;;  %v1072_v58 = vand.u32 4294901760, %v63_v48 }
  0x1a   :  { %128 = vmatpush.msra.mxu1 %v1018_v37  ;;  %232 = vmatpush.msra.mxu2 %v972_v19  ;;  %v1075_v59 = vand.u32 4294901760, %v150_v47  ;;  %v162_v61 = vsub.f32 %v1023_v39, %v1051_v50  ;;  %v1083_v62 = vand.u32 4294901760, %v1054_v51  ;;  %v1086_v63 = vsub.f32 %v64_v42, %v1056_v52 }
  0x1b   :  { %87 = vmatpush.msra.mxu0 %v953_v11  ;;  %283 = vmatpush.msra.mxu3 %v953_v11  ;;  %v1088_v0 = vand.u32 4294901760, %v62_v54  ;;  %v1091_v2 = vand.u32 4294901760, %v156_v53  ;;  %v168_v6 = vsub.f32 %v1036_v44, %v1067_v56  ;;  %v1099_v7 = vand.u32 4294901760, %v1070_v57 }
  0x1c   :  { %134 = vmatpush.msra.mxu1 %v1033_v43  ;;  %235 = vmatpush.msra.mxu2 %v975_v20  ;;  %1355 = vst [vmem:[#allocation12_spill] sm:$0xff] %v1086_v63  ;;  %v1102_v8 = vsub.f32 %v63_v48, %v1072_v58  ;;  %v1104_v12 = vand.u32 4294901760, %v61_v60  ;;  %v1108_v13 = vand.u32 4294901760, %v60_v1  ;;  %v1112_v21 = vand.u32 4294901760, %v162_v61 }
  0x1d   :  { %89 = vmatpush.msra.mxu0 %v966_v17  ;;  %285 = vmatpush.msra.mxu3 %v966_v17  ;;  %v174_v29 = vsub.f32 %v1054_v51, %v1083_v62  ;;  %v1117_v30 = vand.u32 4294901760, %v1086_v63  ;;  %v1120_v31 = vsub.f32 %v62_v54, %v1088_v0  ;;  %v1126_v34 = vand.u32 4294901760, %v168_v6 }
  0x1e   :  { %140 = vmatpush.msra.mxu1 %v1048_v49  ;;  %238 = vmatpush.msra.mxu2 %v998_v28  ;;  %1356 = vst [vmem:[#allocation13_spill] sm:$0xff] %v1102_v8  ;;  %v180_v35 = vsub.f32 %v1070_v57, %v1099_v7  ;;  %v1131_v38 = vand.u32 4294901760, %v1102_v8  ;;  %v1134_v40 = vsub.f32 %v61_v60, %v1104_v12 }
  0x1f   :  { %91 = vmatpush.msra.mxu0 %v988_v25  ;;  %287 = vmatpush.msra.mxu3 %v988_v25  ;;  %v1140_v42 = vand.u32 4294901760, %v174_v29  ;;  %v186_v47 = vsub.f32 %v1086_v63, %v1117_v30  ;;  %v1145_v48 = vand.u32 4294901760, %v1120_v31  ;;  %v1148_v53 = vsub.f32 %v60_v1, %v1108_v13 }
  0x20   :  { %146 = vmatpush.msra.mxu1 %v1064_v55  ;;  %241 = vmatpush.msra.mxu2 %v1023_v39  ;;  %v1154_v54 = vand.u32 4294901760, %v180_v35  ;;  %v192_v60 = vsub.f32 %v1102_v8, %v1131_v38  ;;  %v1159_v61 = vand.u32 4294901760, %v1134_v40 }
  0x21   :  { %93 = vmatpush.msra.mxu0 %v1008_v32  ;;  %289 = vmatpush.msra.mxu3 %v1008_v32  ;;  %v1165_v1 = vand.u32 4294901760, %v186_v47  ;;  %v198_v6 = vsub.f32 %v1120_v31, %v1145_v48  ;;  %v1170_v29 = vand.u32 4294901760, %v1148_v53 }
  0x22   :  { %152 = vmatpush.msra.mxu1 %v1075_v59  ;;  %244 = vmatpush.msra.mxu2 %v1036_v44  ;;  %v1176_v35 = vand.u32 4294901760, %v192_v60  ;;  %v204_v47 = vsub.f32 %v1134_v40, %v1159_v61 }
  0x23   :  { %95 = vmatpush.msra.mxu0 %v1038_v45  ;;  %291 = vmatpush.msra.mxu3 %v1038_v45 }
  0x24   :  { %158 = vmatpush.msra.mxu1 %v1091_v2  ;;  %247 = vmatpush.msra.mxu2 %v1054_v51  ;;  %v1192_v60 = vand.u32 4294901760, %v204_v47 }
  0x25   :  { %97 = vmatpush.msra.mxu0 %v1040_v46  ;;  %293 = vmatpush.msra.mxu3 %v1040_v46 }
  0x26   :  { %164 = vmatpush.msra.mxu1 %v1112_v21  ;;  %250 = vmatpush.msra.mxu2 %v1070_v57 }
  0x27   :  { %99 = vmatpush.msra.mxu0 %v1056_v52  ;;  %295 = vmatpush.msra.mxu3 %v1056_v52 }
  0x28   :  { %170 = vmatpush.msra.mxu1 %v1126_v34  ;;  %253 = vmatpush.msra.mxu2 %v1086_v63  ;;  %v210_v63 = vsub.f32 %v1148_v53, %v1170_v29 }
  0x29   :  { %101 = vmatpush.msra.mxu0 %v1072_v58  ;;  %297 = vmatpush.msra.mxu3 %v1072_v58 }
  0x2a   :  { %176 = vmatpush.msra.mxu1 %v1140_v42  ;;  %256 = vmatpush.msra.mxu2 %v1102_v8  ;;  %v1184_v8 = vand.u32 4294901760, %v198_v6  ;;  %v1198_v6 = vand.u32 4294901760, %v210_v63 }
  0x2b   :  { %103 = vmatpush.msra.mxu0 %v1088_v0  ;;  %299 = vmatpush.msra.mxu3 %v1088_v0 }
  0x2c   :  { %182 = vmatpush.msra.mxu1 %v1154_v54  ;;  %259 = vmatpush.msra.mxu2 %v1120_v31 }
  0x2d   :  { %105 = vmatpush.msra.mxu0 %v1104_v12  ;;  %301 = vmatpush.msra.mxu3 %v1104_v12 }
  0x2e   :  { %188 = vmatpush.msra.mxu1 %v1165_v1  ;;  %262 = vmatpush.msra.mxu2 %v1134_v40 }
  0x2f   :  { %107 = vmatpush.msra.mxu0 %v1108_v13  ;;  %303 = vmatpush.msra.mxu3 %v1108_v13 }
  0x30   :  { %194 = vmatpush.msra.mxu1 %v1176_v35  ;;  %265 = vmatpush.msra.mxu2 %v1148_v53 }
  0x31   :  { %314 = vmatpush.msrb.mxu0 %v980_v22  ;;  %464 = vmatpush.msrb.mxu3 %v1014_v36  ;;  %v1216_v36 = vld [vmem:[#allocation2] sm:$0xf] }
  0x32   :  { %419 = vmatpush.msrb.mxu2 %v943_v3  ;;  %200 = vmatpush.msra.mxu1 %v1184_v8  ;;  %v417_v63 = vmul.f32 %v1216_v36, %v1216_v36 }
  0x33   :  { %318 = vmatpush.msrb.mxu0 %v983_v23  ;;  %470 = vmatpush.msrb.mxu3 %v1018_v37  ;;  %v1225_v37 = vand.u32 4294901760, %v1216_v36 }
  0x34   :  { %421 = vmatpush.msrb.mxu2 %v945_v4  ;;  %206 = vmatpush.msra.mxu1 %v1192_v60 }
  0x35   :  { %322 = vmatpush.msrb.mxu0 %v986_v24  ;;  %476 = vmatpush.msrb.mxu3 %v1033_v43  ;;  %v109_v43 = vsub.f32 %v1216_v36, %v1225_v37 }
  0x36   :  { %423 = vmatpush.msrb.mxu2 %v947_v5  ;;  %212 = vmatpush.msra.mxu1 %v1198_v6 }
  0x37   :  { %326 = vmatpush.msrb.mxu0 %v992_v26  ;;  %482 = vmatpush.msrb.mxu3 %v1048_v49  ;;  %v110_v49 = vand.u32 4294901760, %v109_v43 }
  0x38   :  { %381 = vmatpush.msrb.mxu1 %v943_v3  ;;  %425 = vmatpush.msrb.mxu2 %v949_v9 }
  0x39   :  { %330 = vmatpush.msrb.mxu0 %v995_v27  ;;  %488 = vmatpush.msrb.mxu3 %v1064_v55  ;;  %v111_v55 = vsub.f32 %v109_v43, %v110_v49 }
  0x3a   :  { %383 = vmatpush.msrb.mxu1 %v945_v4  ;;  %427 = vmatpush.msrb.mxu2 %v951_v10 }
  0x3b   :  { %334 = vmatpush.msrb.mxu0 %v1012_v33  ;;  %494 = vmatpush.msrb.mxu3 %v1075_v59  ;;  %v112_v59 = vand.u32 4294901760, %v111_v55 }
  0x3c   :  { %385 = vmatpush.msrb.mxu1 %v947_v5  ;;  %429 = vmatpush.msrb.mxu2 %v953_v11 }
  0x3d   :  { %338 = vmatpush.msrb.mxu0 %v1029_v41  ;;  %500 = vmatpush.msrb.mxu3 %v1091_v2 }
  0x3e   :  { %387 = vmatpush.msrb.mxu1 %v949_v9  ;;  %431 = vmatpush.msrb.mxu2 %v966_v17 }
  0x3f   :  { %342 = vmatpush.msrb.mxu0 %v1051_v50  ;;  %506 = vmatpush.msrb.mxu3 %v1112_v21 }
  0x40   :  { %389 = vmatpush.msrb.mxu1 %v951_v10  ;;  %433 = vmatpush.msrb.mxu2 %v988_v25 }
  0x41   :  { %346 = vmatpush.msrb.mxu0 %v1067_v56  ;;  %512 = vmatpush.msrb.mxu3 %v1126_v34 }
  0x42   :  { %391 = vmatpush.msrb.mxu1 %v953_v11  ;;  %435 = vmatpush.msrb.mxu2 %v1008_v32 }
  0x43   :  { %350 = vmatpush.msrb.mxu0 %v1083_v62  ;;  %518 = vmatpush.msrb.mxu3 %v1140_v42 }
  0x44   :  { %393 = vmatpush.msrb.mxu1 %v966_v17  ;;  %437 = vmatpush.msrb.mxu2 %v1038_v45 }
  0x45   :  { %354 = vmatpush.msrb.mxu0 %v1099_v7  ;;  %524 = vmatpush.msrb.mxu3 %v1154_v54 }
  0x46   :  { %395 = vmatpush.msrb.mxu1 %v988_v25  ;;  %439 = vmatpush.msrb.mxu2 %v1040_v46 }
  0x47   :  { %358 = vmatpush.msrb.mxu0 %v1117_v30  ;;  %530 = vmatpush.msrb.mxu3 %v1165_v1 }
  0x48   :  { %397 = vmatpush.msrb.mxu1 %v1008_v32  ;;  %441 = vmatpush.msrb.mxu2 %v1056_v52 }
  0x49   :  { %362 = vmatpush.msrb.mxu0 %v1131_v38  ;;  %536 = vmatpush.msrb.mxu3 %v1176_v35 }
  0x4a   :  { %399 = vmatpush.msrb.mxu1 %v1038_v45  ;;  %443 = vmatpush.msrb.mxu2 %v1072_v58 }
  0x4b   :  { %366 = vmatpush.msrb.mxu0 %v1145_v48  ;;  %542 = vmatpush.msrb.mxu3 %v1184_v8 }
  0x4c   :  { %401 = vmatpush.msrb.mxu1 %v1040_v46  ;;  %445 = vmatpush.msrb.mxu2 %v1088_v0 }
  0x4d   :  { %370 = vmatpush.msrb.mxu0 %v1159_v61  ;;  %548 = vmatpush.msrb.mxu3 %v1192_v60 }
  0x4e   :  { %403 = vmatpush.msrb.mxu1 %v1056_v52  ;;  %447 = vmatpush.msrb.mxu2 %v1104_v12 }
  0x4f   :  { %268 = vmatmul.f32.vlgmr.msra.gmra.mxu2 %v109_v43  ;;  %374 = vmatpush.msrb.mxu0 %v1170_v29 }
  0x50   :  { %405 = vmatpush.msrb.mxu1 %v1072_v58  ;;  %449 = vmatpush.msrb.mxu2 %v1108_v13 }
  0x51   :  { %113 = vmatmul.f32.vlgmr.msra.gmra.mxu0 %v112_v59  ;;  %307 = vmatmul.f32.vlgmr.msra.gmra.mxu3 %v110_v49 }
  0x52   :  { %407 = vmatpush.msrb.mxu1 %v1088_v0  ;;  %562 = vmatpush.msra.mxu0 %v957_v14  ;;  %v1282_v14 = vand.u32 4294901760, %v417_v63 }
  0x53   :  { %656 = vmatpush.msra.mxu2 %v980_v22  ;;  %554 = vmatpush.msrb.mxu3 %v1198_v6 }
  0x54   :  { %409 = vmatpush.msrb.mxu1 %v1104_v12  ;;  %565 = vmatpush.msra.mxu0 %v960_v15 }
  0x55   :  { %214 = vmatmul.f32.vlgmr.msra.gmra.mxu1 %v1225_v37  ;;  %660 = vmatpush.msra.mxu2 %v983_v23 }
  0x56   :  { %723 = vmatpush.msra.mxu3 %v943_v3  ;;  %411 = vmatpush.msrb.mxu1 %v1108_v13 }
  0x57   :  { %568 = vmatpush.msra.mxu0 %v964_v16  ;;  %664 = vmatpush.msra.mxu2 %v986_v24 }
  0x58   :  { %615 = vmatpush.msra.mxu1 %v943_v3  ;;  %725 = vmatpush.msra.mxu3 %v945_v4  ;;  %v451_v3 = vsub.f32 %v417_v63, %v1282_v14 }
  0x59   :  { %571 = vmatpush.msra.mxu0 %v969_v18  ;;  %668 = vmatpush.msra.mxu2 %v992_v26 }
  0x5a   :  { %617 = vmatpush.msra.mxu1 %v945_v4  ;;  %727 = vmatpush.msra.mxu3 %v947_v5  ;;  %v452_v4 = vand.u32 4294901760, %v451_v3 }
  0x5b   :  { %376 = vmatmul.f32.vlgmr.msrb.gmra.mxu0 %v1225_v37  ;;  %672 = vmatpush.msra.mxu2 %v995_v27 }
  0x5c   :  { %619 = vmatpush.msra.mxu1 %v947_v5  ;;  %574 = vmatpush.msra.mxu0 %v972_v19  ;;  %v453_v5 = vsub.f32 %v451_v3, %v452_v4 }
  0x5d   :  { %729 = vmatpush.msra.mxu3 %v949_v9  ;;  %413 = vmatmul.f32.vlgmr.msrb.gmra.mxu1 %v1225_v37 }
  0x5e   :  { %577 = vmatpush.msra.mxu0 %v975_v20  ;;  %621 = vmatpush.msra.mxu1 %v949_v9  ;;  %v454_v9 = vand.u32 4294901760, %v453_v5 }
  0x5f   :  { %676 = vmatpush.msra.mxu2 %v1012_v33  ;;  %731 = vmatpush.msra.mxu3 %v951_v10 }
  0x60   :  { %580 = vmatpush.msra.mxu0 %v998_v28  ;;  %623 = vmatpush.msra.mxu1 %v951_v10  ;;  %v1357_v10 = vld [vmem:[#allocation12_spill] sm:$0xff] }
  0x61   :  { %680 = vmatpush.msra.mxu2 %v1029_v41  ;;  %733 = vmatpush.msra.mxu3 %v953_v11 }
  0x62   :  { %583 = vmatpush.msra.mxu0 %v1023_v39  ;;  %625 = vmatpush.msra.mxu1 %v953_v11  ;;  %v1358_v11 = vld [vmem:[#allocation13_spill] sm:$0xff] }
  0x63   :  { %684 = vmatpush.msra.mxu2 %v1051_v50  ;;  %735 = vmatpush.msra.mxu3 %v966_v17 }
  0x64   :  { %586 = vmatpush.msra.mxu0 %v1036_v44  ;;  %627 = vmatpush.msra.mxu1 %v966_v17 }
  0x65   :  { %688 = vmatpush.msra.mxu2 %v1067_v56  ;;  %737 = vmatpush.msra.mxu3 %v988_v25 }
  0x66   :  { %589 = vmatpush.msra.mxu0 %v1054_v51  ;;  %629 = vmatpush.msra.mxu1 %v988_v25 }
  0x67   :  { %692 = vmatpush.msra.mxu2 %v1083_v62  ;;  %739 = vmatpush.msra.mxu3 %v1008_v32 }
  0x68   :  { %592 = vmatpush.msra.mxu0 %v1070_v57  ;;  %631 = vmatpush.msra.mxu1 %v1008_v32 }
  0x69   :  { %696 = vmatpush.msra.mxu2 %v1099_v7  ;;  %741 = vmatpush.msra.mxu3 %v1038_v45 }
  0x6a   :  { %595 = vmatpush.msra.mxu0 %v1357_v10  ;;  %633 = vmatpush.msra.mxu1 %v1038_v45 }
  0x6b   :  { %700 = vmatpush.msra.mxu2 %v1117_v30  ;;  %743 = vmatpush.msra.mxu3 %v1040_v46 }
  0x6c   :  { %455 = vmatmul.f32.vlgmr.msrb.gmra.mxu2 %v454_v9  ;;  %556 = vmatmul.f32.vlgmr.msrb.gmra.mxu3 %v1282_v14 }
  0x6d   :  { %598 = vmatpush.msra.mxu0 %v1358_v11  ;;  %635 = vmatpush.msra.mxu1 %v1040_v46 }
  0x6e   :  { %704 = vmatpush.msra.mxu2 %v1131_v38  ;;  %745 = vmatpush.msra.mxu3 %v1056_v52 }
  0x6f   :  { %601 = vmatpush.msra.mxu0 %v1120_v31  ;;  %637 = vmatpush.msra.mxu1 %v1056_v52 }
  0x70   :  { %708 = vmatpush.msra.mxu2 %v1145_v48  ;;  %747 = vmatpush.msra.mxu3 %v1072_v58 }
  0x71   :  { %604 = vmatpush.msra.mxu0 %v1134_v40  ;;  %639 = vmatpush.msra.mxu1 %v1072_v58 }
  0x72   :  { %712 = vmatpush.msra.mxu2 %v1159_v61  ;;  %749 = vmatpush.msra.mxu3 %v1088_v0 }
  0x73   :  { %607 = vmatpush.msra.mxu0 %v1148_v53  ;;  %641 = vmatpush.msra.mxu1 %v1088_v0 }
  0x74   :  { %716 = vmatpush.msra.mxu2 %v1170_v29  ;;  %751 = vmatpush.msra.mxu3 %v1104_v12 }
  0x75   :  { %610 = vmatmul.f32.vlgmr.msra.gmra.mxu0 %v451_v3  ;;  %718 = vmatmul.f32.vlgmr.msra.gmra.mxu2 %v1282_v14 }
  0x76   :  { %643 = vmatpush.msra.mxu1 %v1104_v12  ;;  %753 = vmatpush.msra.mxu3 %v1108_v13  ;;  %v803_v12 = vld [vmem:[#allocation5] ss:$0 sm:$0xff] }
  0x77   :  { %755 = vmatmul.f32.vlgmr.msra.gmra.mxu3 %v1282_v14 }
  0x78   :  { %645 = vmatpush.msra.mxu1 %v1108_v13 }
  0x79   :  { %649 = vmatmul.f32.vlgmr.msra.gmra.mxu1 %v452_v4 }
  0xce   :  { %v114_v15 = vpop.f32.mrf.mxu0 }
  0xd2   :  { %v215_v16 = vpop.f32.mrf.mxu1  ;;  %v269_v18 = vpop.f32.mrf.mxu2 }
  0xd3   :  { %v216_v17 = vadd.f32 %v215_v16, %v114_v15 }
  0xd4   :  { %v308_v19 = vpop.f32.mrf.mxu3 }
  0xd5   :  { %v270_v22 = vadd.f32 %v269_v18, %v216_v17 }
  0xd7   :  { %v309_v24 = vadd.f32 %v308_v19, %v270_v22 }
  0xd8   :  { %v377_v20 = vpop.f32.mrf.mxu0 }
  0xd9   :  { %v378_v32 = vadd.f32 %v377_v20, %v309_v24 }
  0xda   :  { %v414_v23 = vpop.f32.mrf.mxu1 }
  0xdb   :  { %v415_v41 = vadd.f32 %v414_v23, %v378_v32 }
  0xdd   :  { %v759_v51 = vmul.f32 %v415_v41, %v415_v41 }
  0xef   :  { %v456_v25 = vpop.f32.mrf.mxu2  ;;  %v557_v26 = vpop.f32.mrf.mxu3 }
  0xf0   :  { %v558_v27 = vadd.f32 %v557_v26, %v456_v25 }
  0xf2   :  { %v611_v28 = vpop.f32.mrf.mxu0 }
  0xf3   :  { %v612_v33 = vadd.f32 %v611_v28, %v558_v27 }
  0xf6   :  { %v650_v39 = vpop.f32.mrf.mxu1 }
  0xf7   :  { %v651_v44 = vadd.f32 %v650_v39, %v612_v33 }
  0xf8   :  { %v719_v45 = vpop.f32.mrf.mxu2 }
  0xf9   :  { %v720_v46 = vadd.f32 %v719_v45, %v651_v44 }
  0xfa   :  { %v756_v50 = vpop.f32.mrf.mxu3 }
  0xfb   :  { %v757_v52 = vadd.f32 %v756_v50, %v720_v46 }
  0xfd   :  { %v760_v56 = vsub.f32 %v757_v52, %v759_v51 }
  0xff   :  { %v761_v57 = vmax.f32 %v760_v56, 0.0 }
 0x101   :  { %v762_v58 = vadd.f32 1e-05, %v761_v57 }
 0x103   :  { %804 = vrsqrt.f32 %v762_v58  ;;  %vm769_vm1 = vweird.f32 %v762_v58 }
 0x109   :  { %v805_v62 = vpop.eup %804 }
 0x10a   :  { %v764_v0 = vmul.f32 %v805_v62, %v762_v58  ;;  %vm770_vm0 = vweird.f32 %v805_v62 }
 0x10b   :  { %vm771_vm2 = vmor %vm769_vm1, %vm770_vm0 }
 0x10c   :  { %v765_v2 = vmul.f32 %v805_v62, %v764_v0 }
 0x10e   :  { %v766_v7 = vmul.f32 0.5, %v765_v2 }
 0x110   :  { %v767_v8 = vsub.f32 1.5, %v766_v7 }
 0x112   :  { %v768_v13 = vmul.f32 %v805_v62, %v767_v8 }
 0x114   :  { %v772_v21 = vsel %vm771_vm2, %v805_v62, %v768_v13 }
 0x115   :  { %v776_v30 = vmul.f32 %v803_v12, %v772_v21 }
 0x117   :  { %v777_v31 = vmul.f32 %v776_v30, %v1216_v36 }
 0x119   :  { %778 = vst [vmem:[#allocation8] sm:$0xf] %v777_v31 }
 0x11a   :  { %789 = dma.vmem_to_hbm [thread:$0]  %s785_s2, 64, %s787_s30, [#allocation4]  }
 0x11b   :  { %906 = dma.done.wait [#allocation4], 64  }
 0x11c   :  { %907 = vsyncadd [#allocation4], 4294967232 }
 0x11d   :  { %794 = vsyncpa [#allocation3], 1 }
 0x11e   :  { %795 = vsyncpa [#allocation6], 1 }
 0x11f   :  { %796 = vsyncpa [#allocation4], 1 }

</bundles_post_ra>
